<compile_context>
chip_gen: v5e
topology: v5e:2x2
jax: 0.10.0
libtpu: 0.0.40
codegen_flags: <defaults>
</compile_context>

<pallas_src>
import jax
import jax.numpy as jnp
from jax import lax
from jax.experimental import pallas as pl
from jax.experimental.pallas import tpu as pltpu

LN_EPS = 1e-5


def _sublayer_connection_kernel(x_ref, w_ref, bias_ref, o_ref):
    # LayerNorm (normalize only; gamma/beta are folded into W'/b' in the
    # wrapper) in f32 over the hidden (lane) axis; one-pass moments so the two
    # lane reductions are independent.
    x = x_ref[...].astype(jnp.float32)                        # (tm, H)
    n = x.shape[-1]
    s1 = jnp.sum(x, axis=-1, keepdims=True)                   # (tm, 1)
    s2 = jnp.sum(x * x, axis=-1, keepdims=True)               # (tm, 1)
    mean = s1 * (1.0 / n)
    var = s2 * (1.0 / n) - mean * mean
    xn = (x - mean) * lax.rsqrt(var + LN_EPS)                 # (tm, H)

    # Example sublayer Linear(H, H): bf16 operands on the MXU, f32 accumulation.
    y = jnp.dot(xn.astype(w_ref.dtype), w_ref[...],
                preferred_element_type=jnp.float32) + bias_ref[...]

    # Dropout in eval mode == identity; residual add in f32, cast to out dtype.
    o_ref[...] = (x + y).astype(o_ref.dtype)


def _vmem_capacity_bytes():
    try:
        return int(pltpu.get_tpu_info().vmem_capacity_bytes)
    except Exception:
        return 64 * 1024 * 1024          # conservative (v7x-sized) fallback


def _auto_row_tile(hidden, w_itemsize, act_itemsize, vmem_budget, max_tile=4096):
    """Largest multiple-of-8 row tile whose full VMEM footprint fits the budget.

    Per-row bytes: double-buffered x block + double-buffered out block +
    ~4 full-width f32 intermediates materialized in the kernel body.
    The grid-invariant weight/bias buffers are subtracted once.
    """
    per_row = hidden * (2 * act_itemsize + 2 * act_itemsize + 4 * 4)
    const_bytes = 2 * hidden * hidden * w_itemsize + 4 * hidden * 4
    row_budget = max(vmem_budget - const_bytes, 2 * 1024 * 1024)
    tm = (row_budget // per_row) // 8 * 8
    return int(max(8, min(max_tile, tm)))


def sublayer_connection(x, gamma, beta, w, b, *, row_tile=None,
                        mxu_dtype=jnp.bfloat16):
    """x: (batch, seq, hidden). Returns x + Linear(LayerNorm(x)) (dropout in eval)."""
    batch, seq, hidden = x.shape
    rows = batch * seq
    x2d = x.reshape(rows, hidden)

    # Fold gamma into the weight and beta into the bias:
    #   (xn*gamma + beta) @ W + b == xn @ (gamma[:,None] * W) + (beta @ W + b).
    w_f32 = w.astype(jnp.float32)
    w_fused = (gamma.astype(jnp.float32)[:, None] * w_f32).astype(mxu_dtype)
    bias_fused = (beta.astype(jnp.float32) @ w_f32
                  + b.astype(jnp.float32)).reshape(1, hidden)

    act_itemsize = x.dtype.itemsize
    w_itemsize = jnp.dtype(mxu_dtype).itemsize
    vmem_cap = _vmem_capacity_bytes()

    # ---- row-tile sizing: bytes-driven, generation-aware, no padding ----
    if row_tile is None:
        row_tile = _auto_row_tile(hidden, w_itemsize, act_itemsize,
                                  vmem_budget=int(vmem_cap * 0.6))
    row_tile = max(8, (int(row_tile) // 8) * 8)
    if row_tile >= rows:
        row_tile = rows                  # single block == full dim (always legal)
    # Last block may be partial: Pallas masks the out-of-bounds writes, and
    # every op (LN, matmul, residual) is row-wise so garbage tail rows stay
    # confined to rows that are never written back.
    grid = (pl.cdiv(rows, row_tile),)

    # ---- VMEM limit: always explicit (v5e default scoped limit is 16 MiB) ----
    est_vmem = (2 * row_tile * hidden * act_itemsize       # x double buffer
                + 2 * row_tile * hidden * act_itemsize     # out double buffer
                + 4 * row_tile * hidden * 4                # f32 intermediates
                + 2 * hidden * hidden * w_itemsize         # weight buffers
                + 4 * hidden * 4)                          # fused bias
    vmem_limit = int(min(max(est_vmem * 1.25, 32 * 1024 * 1024),
                         vmem_cap * 0.9))

    cost = pl.CostEstimate(
        flops=2 * rows * hidden * hidden + 8 * rows * hidden,
        transcendentals=rows,
        bytes_accessed=(2 * rows * hidden * act_itemsize
                        + hidden * hidden * w_itemsize + 2 * hidden * 4),
    )

    out2d = pl.pallas_call(
        _sublayer_connection_kernel,
        out_shape=jax.ShapeDtypeStruct((rows, hidden), x.dtype),
        grid_spec=pltpu.PrefetchScalarGridSpec(
            num_scalar_prefetch=0,
            grid=grid,
            in_specs=[
                pl.BlockSpec((row_tile, hidden), lambda i: (i, 0)),   # x rows
                pl.BlockSpec((hidden, hidden), lambda i: (0, 0)),     # gamma*W (bf16)
                pl.BlockSpec((1, hidden), lambda i: (0, 0)),          # beta@W + b
            ],
            out_specs=pl.BlockSpec((row_tile, hidden), lambda i: (i, 0)),
        ),
        compiler_params=pltpu.CompilerParams(
            dimension_semantics=("parallel",),   # shards row blocks across TCs on v7x
            vmem_limit_bytes=vmem_limit,
        ),
        cost_estimate=cost,
    )(x2d, w_fused, bias_fused)

    return out2d.reshape(batch, seq, hidden)


def _reference(x, gamma, beta, w, b):
    xf = x.astype(jnp.float32)
    mean = jnp.mean(xf, axis=-1, keepdims=True)
    var = jnp.mean((xf - mean) ** 2, axis=-1, keepdims=True)
    xn = (xf - mean) * lax.rsqrt(var + LN_EPS)
    h = xn * gamma + beta
    y = jnp.einsum("bsh,hk->bsk", h, w) + b
    return (xf + y).astype(x.dtype)


if __name__ == "__main__":
    key = jax.random.PRNGKey(0)
    keys = jax.random.split(key, 8)

    # ---- case 1: the module's small config (args.hidden=32, eval dropout) ----
    batch, seq, hidden = 2, 8, 32
    x = jax.random.normal(keys[0], (batch, seq, hidden), dtype=jnp.float32)
    gamma = jnp.ones((hidden,), jnp.float32)    # PyTorch LayerNorm default init
    beta = jnp.zeros((hidden,), jnp.float32)
    w = jax.random.normal(keys[1], (hidden, hidden), jnp.float32) * 0.02
    b = jax.random.normal(keys[2], (hidden,), jnp.float32) * 0.02

    out = jax.block_until_ready(sublayer_connection(x, gamma, beta, w, b))
    ref = _reference(x, gamma, beta, w, b)
    assert out.shape == x.shape and out.dtype == x.dtype
    # tolerance reflects bf16 MXU operands with f32 accumulation
    assert jnp.allclose(out, ref, atol=1e-2, rtol=1e-2), "case 1 mismatch vs reference"

    # ---- case 2: multi-step grid + ragged (masked) last block, no padding ----
    batch2, seq2, hidden2 = 2, 150, 128   # rows=300, row_tile=128 -> 3 blocks, 44-row tail
    x2 = jax.random.normal(keys[3], (batch2, seq2, hidden2), dtype=jnp.float32)
    gamma2 = 1.0 + 0.1 * jax.random.normal(keys[4], (hidden2,), jnp.float32)
    beta2 = 0.1 * jax.random.normal(keys[5], (hidden2,), jnp.float32)
    w2 = jax.random.normal(keys[6], (hidden2, hidden2), jnp.float32) * 0.02
    b2 = jax.random.normal(keys[7], (hidden2,), jnp.float32) * 0.02

    out2 = jax.block_until_ready(
        sublayer_connection(x2, gamma2, beta2, w2, b2, row_tile=128))
    ref2 = _reference(x2, gamma2, beta2, w2, b2)
    assert out2.shape == x2.shape and out2.dtype == x2.dtype
    assert jnp.allclose(out2, ref2, atol=1e-2, rtol=1e-2), "case 2 mismatch vs reference"

    print("KERNEL_OK")
</pallas_src>

<mosaic_0001>
module attributes {stable_mosaic.version = 11 : i64} {
  func.func @_sublayer_connection_kernel(%arg0: i32, %arg1: memref<16x32xf32, #tpu.memory_space<vmem>>, %arg2: memref<32x32xbf16, #tpu.memory_space<vmem>>, %arg3: memref<1x32xf32, #tpu.memory_space<vmem>>, %arg4: memref<16x32xf32, #tpu.memory_space<vmem>>) attributes {dimension_semantics = [#tpu.dimension_semantics<parallel>], iteration_bounds = array<i64: 1>, scalar_prefetch = 0 : i64, scratch_operands = 0 : i64, tpu.core_type = #tpu.core_type<tc>, window_params = [{transform_indices = @transform_0, window_bounds = array<i64: 16, 32>}, {pipeline_mode = #tpu.pipeline_mode<synchronous>, transform_indices = @transform_1, window_bounds = array<i64: 32, 32>}, {pipeline_mode = #tpu.pipeline_mode<synchronous>, transform_indices = @transform_2, window_bounds = array<i64: 1, 32>}, {transform_indices = @transform_3, window_bounds = array<i64: 16, 32>}]} {
    %c0 = arith.constant 0 : index
    %c0_0 = arith.constant 0 : index
    %0 = vector.load %arg1[%c0, %c0_0] : memref<16x32xf32, #tpu.memory_space<vmem>>, vector<16x32xf32>
    %cst = arith.constant dense<0.000000e+00> : vector<16xf32>
    %1 = vector.multi_reduction <add>, %0, %cst [1] : vector<16x32xf32> to vector<16xf32>
    %2 = vector.shape_cast %1 : vector<16xf32> to vector<16x1xf32>
    %3 = arith.mulf %0, %0 : vector<16x32xf32>
    %cst_1 = arith.constant dense<0.000000e+00> : vector<16xf32>
    %4 = vector.multi_reduction <add>, %3, %cst_1 [1] : vector<16x32xf32> to vector<16xf32>
    %5 = vector.shape_cast %4 : vector<16xf32> to vector<16x1xf32>
    %cst_2 = arith.constant 3.125000e-02 : f32
    %6 = vector.broadcast %cst_2 : f32 to vector<16x1xf32>
    %7 = arith.mulf %2, %6 : vector<16x1xf32>
    %cst_3 = arith.constant 3.125000e-02 : f32
    %8 = vector.broadcast %cst_3 : f32 to vector<16x1xf32>
    %9 = arith.mulf %5, %8 : vector<16x1xf32>
    %10 = arith.mulf %7, %7 : vector<16x1xf32>
    %11 = arith.subf %9, %10 : vector<16x1xf32>
    %12 = vector.broadcast %7 : vector<16x1xf32> to vector<16x32xf32>
    %13 = arith.subf %0, %12 : vector<16x32xf32>
    %cst_4 = arith.constant 9.99999974E-6 : f32
    %14 = vector.broadcast %cst_4 : f32 to vector<16x1xf32>
    %15 = arith.addf %11, %14 : vector<16x1xf32>
    %16 = math.rsqrt %15 : vector<16x1xf32>
    %17 = vector.broadcast %16 : vector<16x1xf32> to vector<16x32xf32>
    %18 = arith.mulf %13, %17 : vector<16x32xf32>
    %19 = arith.truncf %18 : vector<16x32xf32> to vector<16x32xbf16>
    %c0_5 = arith.constant 0 : index
    %c0_6 = arith.constant 0 : index
    %20 = vector.load %arg2[%c0_5, %c0_6] : memref<32x32xbf16, #tpu.memory_space<vmem>>, vector<32x32xbf16>
    %cst_7 = arith.constant dense<0.000000e+00> : vector<16x32xf32>
    %21 = tpu.matmul %19, %20, %cst_7 {dimension_numbers = #tpu.dot_dimension_numbers<[1], [0], [0], [1], [0, 0, 1, 1], [], []>} : vector<16x32xbf16>, vector<32x32xbf16>, vector<16x32xf32> -> vector<16x32xf32>
    %c0_8 = arith.constant 0 : index
    %c0_9 = arith.constant 0 : index
    %22 = vector.load %arg3[%c0_8, %c0_9] : memref<1x32xf32, #tpu.memory_space<vmem>>, vector<1x32xf32>
    %23 = vector.broadcast %22 : vector<1x32xf32> to vector<16x32xf32>
    %24 = arith.addf %21, %23 : vector<16x32xf32>
    %25 = arith.addf %0, %24 : vector<16x32xf32>
    %c0_10 = arith.constant 0 : index
    %c0_11 = arith.constant 0 : index
    %26 = vector.load %arg4[%c0_10, %c0_11] : memref<16x32xf32, #tpu.memory_space<vmem>>, vector<16x32xf32>
    tpu.vector_store %arg4[%c0_10, %c0_11], %25 {strides = array<i32>} : memref<16x32xf32, #tpu.memory_space<vmem>>, vector<16x32xf32>,
    return
  }
  func.func @transform_0(%arg0: i32) -> (i32, i32) {
    %c0_i32 = arith.constant 0 : i32
    %c0_i32_0 = arith.constant 0 : i32
    return %arg0, %c0_i32 : i32, i32
  }
  func.func @transform_1(%arg0: i32) -> (i32, i32) {
    %c0_i32 = arith.constant 0 : i32
    %c0_i32_0 = arith.constant 0 : i32
    %c0_i32_1 = arith.constant 0 : i32
    return %c0_i32, %c0_i32_0 : i32, i32
  }
  func.func @transform_2(%arg0: i32) -> (i32, i32) {
    %c0_i32 = arith.constant 0 : i32
    %c0_i32_0 = arith.constant 0 : i32
    %c0_i32_1 = arith.constant 0 : i32
    return %c0_i32, %c0_i32_0 : i32, i32
  }
  func.func @transform_3(%arg0: i32) -> (i32, i32) {
    %c0_i32 = arith.constant 0 : i32
    %c0_i32_0 = arith.constant 0 : i32
    return %arg0, %c0_i32 : i32, i32
  }
}

</mosaic_0001>

<bundles_post_ra>
// kernel: tpu_custom_call.1
= control target key start
LH: loop header
LB: loop body
LE: loop exit
PB: predicated region body
PF: predicated region fallthrough
CT: control target
= control target key end

     0   :  { %8 = vsyncpa [#allocation3], 0  ;;  %s321_s0 = inlined_call_operand.hbm [shape: f32[16,32], index: 0, kind: input, shape index: {}]   ;;  %s322_s1 = inlined_call_operand.hbm [shape: bf16[32,32], index: 1, kind: input, shape index: {}]   ;;  %s323_s2 = inlined_call_operand.vmem [shape: f32[1,32], index: 2, kind: input, shape index: {}]   ;;  %s324_s3 = inlined_call_operand.hbm [shape: f32[16,32], index: 3, kind: output, shape index: {}]  }
   0x1   :  { %9 = vsyncpa [#allocation6], 0 }
   0x2   :  { %10 = vsyncpa [#allocation4], 0  ;;  %s15_s14 = sshll.u32 %s321_s0, 4  ;;  %s262_s15 = smov [#allocation2]   ;;  %s16_s14 = int_to_ptr.hbm [resolvable:$true] %s15_s14 }
   0x3   :  { %s17_s16 = sshll.u32 %s262_s15, 4  ;;  %s28_s19 = sshll.u32 %s322_s1, 4  ;;  %s18_s16 = int_to_ptr.vmem [resolvable:$true] %s17_s16  ;;  %s29_s19 = int_to_ptr.hbm [resolvable:$true] %s28_s19 }
   0x4   :  { %s263_s20 = smov 128   ;;  %s264_s21 = smov 8  }
   0x5   :  { %23 = dma.hbm_to_vmem [thread:$0]  %s16_s14, 256, %s18_s16, [#allocation3], %s263_s20, %s263_s20, %s264_s21  }
   0x6   :  { %s265_s22 = smov [#allocation5]   ;;  %s266_s24 = smov 64  }
   0x7   :  { %s30_s23 = sshll.u32 %s265_s22, 4  ;;  %s267_s0 = smov 4   ;;  %s31_s23 = int_to_ptr.vmem [resolvable:$true] %s30_s23 }
   0x8   :  { %36 = dma.hbm_to_vmem [thread:$0]  %s29_s19, 256, %s31_s23, [#allocation6], %s266_s24, %s266_s24, %s267_s0  }
   0x9   :  { %256 = dma.done.wait [#allocation3], 256  }
   0xa   :  { %257 = vsyncadd [#allocation3], 4294967040 }
   0xb   :  { %258 = dma.done.wait [#allocation6], 256  }
   0xc   :  { %259 = vsyncadd [#allocation6], 4294967040  ;;  %vm50_vm0 = vcmask 261120   ;;  %v48_v0 = vld [vmem:[#allocation2] sm:$0xff]  ;;  %v299_v3 = vld [vmem:[#allocation2 + $0x8] sm:$0xff]  ;;  %s268_s26 = smov [#allocation7]  }
   0xd   :  { %v51_v1 = vsel %vm50_vm0, %v48_v0, 0.0  ;;  %v57_v2 = vmul.f32 %v48_v0, %v48_v0  ;;  %v58_v5 = vmul.f32 %v299_v3, %v299_v3  ;;  %v54_v6 = vsel %vm50_vm0, %v299_v3, 0.0  ;;  %v171_v8 = vld [vmem:[#allocation5 + $0x8] sm:$0xff]  ;;  %v170_v10 = vld [vmem:[#allocation5] sm:$0xff]  ;;  %v179_v43 = vld [vmem:[%s323_s2] ss:$0 sm:$0xff] }
   0xe   :  { %52 = vadd.xlane.f32.xlu0 %v51_v1  ;;  %129 = vmatpush.bf16.msra.mxu0 %v171_v8  ;;  %s145_s27 = sshll.u32 %s268_s26, 4  ;;  %s147_s30 = sshll.u32 %s324_s3, 4  ;;  %s146_s27 = int_to_ptr.vmem [resolvable:$true] %s145_s27  ;;  %s148_s30 = int_to_ptr.hbm [resolvable:$true] %s147_s30 }
   0xf   :  { %v59_v4 = vsel %vm50_vm0, %v57_v2, 0.0  ;;  %v62_v7 = vsel %vm50_vm0, %v58_v5, 0.0 }
  0x10   :  { %60 = vadd.xlane.f32.xlu1 %v59_v4 }
  0x12   :  { %130 = vmatpush.bf16.msra.mxu0 %v170_v10 }
  0x16   :  { %55 = vadd.xlane.f32.xlu0 %v54_v6 }
  0x18   :  { %63 = vadd.xlane.f32.xlu1 %v62_v7 }
  0x81   :  { %v53_v9 = vpop.xlane.xlu0 %52 }
  0x82   :  { %v65_v11 = vmul.f32 0.03125, %v53_v9 }
  0x83   :  { %v61_v12 = vpop.xlane.xlu1 %60 }
  0x84   :  { %v69_v13 = vmul.f32 %v65_v11, %v65_v11  ;;  %v67_v14 = vmul.f32 0.03125, %v61_v12  ;;  %v73_v37 = vsub.f32 %v48_v0, %v65_v11 }
  0x86   :  { %v71_v15 = vsub.f32 %v67_v14, %v69_v13 }
  0x88   :  { %v75_v16 = vadd.f32 1e-05, %v71_v15 }
  0x89   :  { %v56_v17 = vpop.xlane.xlu0 %55 }
  0x8a   :  { %180 = vrsqrt.f32 %v75_v16  ;;  %v66_v18 = vmul.f32 0.03125, %v56_v17  ;;  %vm83_vm2 = vweird.f32 %v75_v16 }
  0x8b   :  { %v64_v19 = vpop.xlane.xlu1 %63 }
  0x8c   :  { %v70_v20 = vmul.f32 %v66_v18, %v66_v18  ;;  %v68_v21 = vmul.f32 0.03125, %v64_v19  ;;  %v74_v38 = vsub.f32 %v299_v3, %v66_v18 }
  0x8e   :  { %v72_v22 = vsub.f32 %v68_v21, %v70_v20 }
  0x90   :  { %v181_v23 = vpop.eup %180  ;;  %v76_v24 = vadd.f32 1e-05, %v72_v22 }
  0x91   :  { %v78_v25 = vmul.f32 %v181_v23, %v75_v16  ;;  %vm84_vm1 = vweird.f32 %v181_v23 }
  0x92   :  { %182 = vrsqrt.f32 %v76_v24  ;;  %vm85_vm4 = vmor %vm83_vm2, %vm84_vm1  ;;  %vm93_vm5 = vweird.f32 %v76_v24 }
  0x93   :  { %v79_v26 = vmul.f32 %v181_v23, %v78_v25 }
  0x95   :  { %v80_v27 = vmul.f32 0.5, %v79_v26 }
  0x97   :  { %v81_v29 = vsub.f32 1.5, %v80_v27 }
  0x98   :  { %v183_v28 = vpop.eup %182 }
  0x99   :  { %v88_v30 = vmul.f32 %v183_v28, %v76_v24  ;;  %v82_v33 = vmul.f32 %v181_v23, %v81_v29  ;;  %vm94_vm3 = vweird.f32 %v183_v28 }
  0x9a   :  { %vm95_vm6 = vmor %vm93_vm5, %vm94_vm3 }
  0x9b   :  { %v89_v31 = vmul.f32 %v183_v28, %v88_v30  ;;  %v86_v35 = vsel %vm85_vm4, %v181_v23, %v82_v33 }
  0x9c   :  { %v97_v40 = vmul.f32 %v86_v35, %v73_v37 }
  0x9d   :  { %v90_v32 = vmul.f32 0.5, %v89_v31 }
  0x9f   :  { %v91_v34 = vsub.f32 1.5, %v90_v32 }
  0xa1   :  { %v92_v36 = vmul.f32 %v183_v28, %v91_v34 }
  0xa3   :  { %v96_v39 = vsel %vm95_vm6, %v183_v28, %v92_v36 }
  0xa4   :  { %v98_v41 = vmul.f32 %v96_v39, %v74_v38 }
  0xa6   :  { %v99_v42 = vpack.c.bf16 %v98_v41, %v97_v40 }
  0xa8   :  { %169 = vmatmul.msk.bf16.vlgmr.msra.gmra.mxu0 %vm50_vm0, %v99_v42 }
 0x125   :  { %v132_v44 = vpop.f32.mrf.mxu0 }
 0x126   :  { %v133_v45 = vadd.f32 %v179_v43, %v132_v44 }
 0x128   :  { %v137_v46 = vadd.f32 %v133_v45, %v48_v0 }
 0x12a   :  { %139 = vst.msk [vmem:[#allocation7] sm:$0xff] %vm50_vm0, %v137_v46 }
 0x12d   :  { %v134_v47 = vpop.f32.mrf.mxu0 }
 0x12e   :  { %v135_v48 = vadd.f32 %v179_v43, %v134_v47 }
 0x130   :  { %v138_v49 = vadd.f32 %v135_v48, %v299_v3 }
 0x132   :  { %140 = vst.msk [vmem:[#allocation7 + $0x8] sm:$0xff] %vm50_vm0, %v138_v49 }
 0x133   :  { %153 = dma.vmem_to_hbm [thread:$0]  %s146_s27, 256, %s148_s30, [#allocation4], %s263_s20, %s263_s20, %s264_s21  }
 0x134   :  { %260 = dma.done.wait [#allocation4], 256  }
 0x135   :  { %261 = vsyncadd [#allocation4], 4294967040 }
 0x136   :  { %158 = vsyncpa [#allocation3], 1 }
 0x137   :  { %159 = vsyncpa [#allocation6], 1 }
 0x138   :  { %160 = vsyncpa [#allocation4], 1 }

</bundles_post_ra>
